<compile_context>
chip_gen: v7x
topology: tpu7x:2x2x1
jax: 0.10.0
libtpu: 0.0.40
codegen_flags: <defaults>
</compile_context>

<pallas_src>
import numpy as np
import jax
import jax.numpy as jnp
from jax import lax
from jax.experimental import pallas as pl
from jax.experimental.pallas import tpu as pltpu


# ----------------------------- JAX glue (im2col) -----------------------------

def im2col_cfirst(x_cnhw, kh, kw, sh, sw, ph, pw):
    """Extract conv patches from channel-first (C, N, H, W) input.

    Returns (C*kh*kw, N, Ho, Wo) with the K axis ordered (c, di, dj), matching
    torch's weight.reshape(Cout, Cin*kh*kw) flattening.  No transposes over the
    kh*kw-inflated tensor are required downstream.
    """
    C, N, H, W = x_cnhw.shape
    xp = jnp.pad(x_cnhw, ((0, 0), (0, 0), (ph, ph), (pw, pw)))
    Ho = (H + 2 * ph - kh) // sh + 1
    Wo = (W + 2 * pw - kw) // sw + 1
    patches = []
    for di in range(kh):
        for dj in range(kw):
            p = lax.slice(
                xp,
                (0, 0, di, dj),
                (C, N, di + sh * (Ho - 1) + 1, dj + sw * (Wo - 1) + 1),
                (1, 1, sh, sw),
            )  # (C, N, Ho, Wo)
            patches.append(p)
    cols = jnp.stack(patches, axis=1)                 # (C, kh*kw, N, Ho, Wo)
    return cols.reshape(C * kh * kw, N, Ho, Wo), Ho, Wo


# --------------------------- lane-axis tiling choice --------------------------

_LANE_BLOCK_VMEM_BUDGET = 8 << 20   # bytes per double-buffered act+out block


def _num_lane_tiles(total_lanes, kf, cout):
    """Grid tiles along the fused lane axis (N*H1*W1).

    >= 2 on two-TensorCore chips (v7x) when the split stays 128-lane aligned,
    grown further until the double-buffered activation + output block fits a
    modest VMEM budget (v7x: 32 MiB scoped / 64 MiB physical).
    """
    kind = getattr(jax.devices()[0], "device_kind", "").lower()
    tiles = 2 if ("v7" in kind or "7x" in kind) else 1

    def aligned(t):
        return total_lanes % t == 0 and (total_lanes // t) % 128 == 0

    if not aligned(tiles):
        tiles = 1

    def block_bytes(t):
        lt = total_lanes // t
        return 2 * (kf * lt * 2 + cout * lt * 4)   # bf16 act + f32 out, x2 bufs

    while block_bytes(tiles) > _LANE_BLOCK_VMEM_BUDGET and aligned(tiles * 2):
        tiles *= 2
    return tiles


# ------------------------------- Pallas kernel -------------------------------

def _make_gated_kernel(cout):
    def kernel(w_ref, a_ref, o_ref):
        # w_ref: (2*Cout, Kf) bf16 block-diag [conv | gate] weights + bias col.
        # a_ref: (Kf, Lt)     bf16 [conv patches; gate patches; ones].
        # o_ref: (Cout, Lt)   f32.
        fused = jnp.dot(w_ref[...], a_ref[...],
                        preferred_element_type=jnp.float32)       # (2*Cout, Lt)
        conv = fused[:cout, :]                 # 8-row sublane-aligned slices
        gate = jax.nn.sigmoid(fused[cout:, :])
        o_ref[...] = (conv * gate).astype(o_ref.dtype)
    return kernel


def gated_conv2d_shared(x, conv_w, conv_b, gate_w, gate_b, *,
                        stride, padding, shared_scale_factor,
                        num_lane_tiles=None):
    N, Cin, H, W = x.shape
    Cout = conv_w.shape[0]
    kh, kw = conv_w.shape[2], conv_w.shape[3]
    khg, kwg = gate_w.shape[2], gate_w.shape[3]
    S = shared_scale_factor
    sh, sw = stride
    ph = pw = padding

    # One small transpose of the raw input so patch columns come out
    # channel-major with (n, h, w) on the lane side; no transposes of the
    # inflated im2col tensors afterwards.
    xc = jnp.transpose(x, (1, 0, 2, 3))                               # (Cin,N,H,W)

    ac, H1, W1 = im2col_cfirst(xc, kh, kw, sh, sw, ph, pw)            # (K1,N,H1,W1)
    ag, H2, W2 = im2col_cfirst(xc, khg, kwg, sh * S, sw, ph * S, pw)  # (K2,N,H2,W2)
    assert W2 == W1 and H2 * S == H1, "gate/conv output shapes incompatible"

    K1 = Cin * kh * kw
    K2 = Cin * khg * kwg
    Kf = K1 + K2 + 1                 # + ones row for the folded biases
    L = N * H1 * W1                  # fused lane axis (n, h1, w1)

    # Gate row h2 applies to conv rows h1 = h2*S .. h2*S+S-1: replicate the
    # gate patch rows so the fused matmul shares one lane axis.
    ag = jnp.repeat(ag, S, axis=2)                                    # (K2,N,H1,W1)

    # Fused activation: [conv patches; gate patches; ones] -> (Kf, L) bf16.
    a_fused = jnp.concatenate([
        ac.reshape(K1, L),
        ag.reshape(K2, L),
        jnp.ones((1, L), x.dtype),
    ], axis=0).astype(jnp.bfloat16)

    # Fused block-diagonal weight with bias column:
    #   rows [0, Cout)      : [wc, 0,  bc]
    #   rows [Cout, 2*Cout) : [0,  wg, bg]
    wc = conv_w.reshape(Cout, K1)
    wg = gate_w.reshape(Cout, K2)
    w_top = jnp.concatenate(
        [wc, jnp.zeros((Cout, K2), wc.dtype), conv_b.reshape(Cout, 1)], axis=1)
    w_bot = jnp.concatenate(
        [jnp.zeros((Cout, K1), wg.dtype), wg, gate_b.reshape(Cout, 1)], axis=1)
    w_fused = jnp.concatenate([w_top, w_bot], axis=0).astype(jnp.bfloat16)

    tiles = (num_lane_tiles if num_lane_tiles is not None
             else _num_lane_tiles(L, Kf, Cout))
    lt = L // tiles

    out = pl.pallas_call(
        _make_gated_kernel(Cout),
        out_shape=jax.ShapeDtypeStruct((Cout, L), jnp.float32),
        grid=(tiles,),
        in_specs=[
            pl.BlockSpec((2 * Cout, Kf), lambda t: (0, 0)),   # fused weight (grid-invariant)
            pl.BlockSpec((Kf, lt), lambda t: (0, t)),         # fused activation lane tile
        ],
        out_specs=pl.BlockSpec((Cout, lt), lambda t: (0, t)),
        compiler_params=pltpu.CompilerParams(
            dimension_semantics=("parallel",)),
    )(w_fused, a_fused)

    # (Cout, N*H1*W1) with lanes ordered (n, h1, w1); restore NCHW with one
    # cheap transpose of the (non-inflated) output.
    return out.reshape(Cout, N, H1, W1).transpose(1, 0, 2, 3)


# ------------------------------ plain-JAX reference ---------------------------

def reference(x, conv_w, conv_b, gate_w, gate_b, *, stride, padding, S):
    # Same quantization as the kernel (bf16 operands/biases, f32 accumulation)
    # so the comparison isolates kernel correctness, not matmul precision mode.
    dn = ('NCHW', 'OIHW', 'NCHW')
    xb = x.astype(jnp.bfloat16)
    bc = conv_b.astype(jnp.bfloat16).astype(jnp.float32)
    bg = gate_b.astype(jnp.bfloat16).astype(jnp.float32)
    conv_out = lax.conv_general_dilated(
        xb, conv_w.astype(jnp.bfloat16), window_strides=stride,
        padding=((padding, padding), (padding, padding)),
        dimension_numbers=dn, preferred_element_type=jnp.float32,
    ) + bc.reshape(1, -1, 1, 1)
    gate_out = lax.conv_general_dilated(
        xb, gate_w.astype(jnp.bfloat16),
        window_strides=(stride[0] * S, stride[1]),
        padding=((padding * S, padding * S), (padding, padding)),
        dimension_numbers=dn, preferred_element_type=jnp.float32,
    ) + bg.reshape(1, -1, 1, 1)
    gate_out = jax.nn.sigmoid(gate_out)
    N, Co, H1, W1 = conv_out.shape
    cr = conv_out.reshape(N, Co, H1 // S, S, W1)
    return (cr * gate_out[:, :, :, None, :]).reshape(N, Co, H1, W1)


# ------------------------------------ main ------------------------------------

if __name__ == "__main__":
    # Module config: GatedConv2dShared(4, 8, (3,3), (1,1), 1, shared_scale_factor=2)
    N, Cin, H, W = 2, 4, 16, 16
    Cout = 8
    kernel_size = (3, 3)
    stride = (1, 1)
    padding = 1
    S = 2  # shared_scale_factor

    key = jax.random.PRNGKey(0)
    k1, k2, k3, k4, k5 = jax.random.split(key, 5)
    x = jax.random.normal(k1, (N, Cin, H, W), jnp.float32)
    conv_w = jax.random.normal(k2, (Cout, Cin, kernel_size[0], kernel_size[1]),
                               jnp.float32) * 0.1
    conv_b = jax.random.normal(k3, (Cout,), jnp.float32) * 0.1
    gate_w = jax.random.normal(k4, (Cout, Cin, kernel_size[0] * S, kernel_size[1]),
                               jnp.float32) * 0.1
    gate_b = jax.random.normal(k5, (Cout,), jnp.float32) * 0.1

    out = gated_conv2d_shared(x, conv_w, conv_b, gate_w, gate_b,
                              stride=stride, padding=padding,
                              shared_scale_factor=S)
    out = jax.block_until_ready(out)

    ref = reference(x, conv_w, conv_b, gate_w, gate_b,
                    stride=stride, padding=padding, S=S)
    assert out.shape == (N, Cout, H, W)
    np.testing.assert_allclose(np.asarray(out), np.asarray(ref),
                               atol=2e-3, rtol=2e-3)
    print("KERNEL_OK")
</pallas_src>

<mosaic_0001>
module attributes {stable_mosaic.version = 11 : i64} {
  func.func @kernel(%arg0: i32, %arg1: memref<16x109xbf16, #tpu.memory_space<vmem>>, %arg2: memref<109x512xbf16, #tpu.memory_space<vmem>>, %arg3: memref<8x512xf32, #tpu.memory_space<vmem>>) attributes {dimension_semantics = [#tpu.dimension_semantics<parallel>], iteration_bounds = array<i64: 1>, scalar_prefetch = 0 : i64, scratch_operands = 0 : i64, tpu.core_type = #tpu.core_type<tc>, window_params = [{pipeline_mode = #tpu.pipeline_mode<synchronous>, transform_indices = @transform_0, window_bounds = array<i64: 16, 109>}, {transform_indices = @transform_1, window_bounds = array<i64: 109, 512>}, {transform_indices = @transform_2, window_bounds = array<i64: 8, 512>}]} {
    %c0 = arith.constant 0 : index
    %c0_0 = arith.constant 0 : index
    %0 = vector.load %arg1[%c0, %c0_0] : memref<16x109xbf16, #tpu.memory_space<vmem>>, vector<16x109xbf16>
    %c0_1 = arith.constant 0 : index
    %c0_2 = arith.constant 0 : index
    %1 = vector.load %arg2[%c0_1, %c0_2] : memref<109x512xbf16, #tpu.memory_space<vmem>>, vector<109x512xbf16>
    %cst = arith.constant dense<0.000000e+00> : vector<16x512xf32>
    %2 = tpu.matmul %0, %1, %cst {dimension_numbers = #tpu.dot_dimension_numbers<[1], [0], [0], [1], [0, 0, 1, 1], [], []>} : vector<16x109xbf16>, vector<109x512xbf16>, vector<16x512xf32> -> vector<16x512xf32>
    %3 = vector.extract_strided_slice %2 {offsets = [0, 0], sizes = [8, 512], strides = [1, 1]} : vector<16x512xf32> to vector<8x512xf32>
    %4 = vector.extract_strided_slice %2 {offsets = [8, 0], sizes = [8, 512], strides = [1, 1]} : vector<16x512xf32> to vector<8x512xf32>
    %5 = arith.negf %4 : vector<8x512xf32>
    %6 = math.exp %5 : vector<8x512xf32>
    %cst_3 = arith.constant 1.000000e+00 : f32
    %7 = vector.broadcast %cst_3 : f32 to vector<8x512xf32>
    %8 = arith.addf %7, %6 : vector<8x512xf32>
    %9 = arith.divf %7, %8 : vector<8x512xf32>
    %10 = arith.mulf %3, %9 : vector<8x512xf32>
    %c0_4 = arith.constant 0 : index
    %c0_5 = arith.constant 0 : index
    %11 = vector.load %arg3[%c0_4, %c0_5] : memref<8x512xf32, #tpu.memory_space<vmem>>, vector<8x512xf32>
    tpu.vector_store %arg3[%c0_4, %c0_5], %10 {strides = array<i32>} : memref<8x512xf32, #tpu.memory_space<vmem>>, vector<8x512xf32>,
    return
  }
  func.func @transform_0(%arg0: i32) -> (i32, i32) {
    %c0_i32 = arith.constant 0 : i32
    %c0_i32_0 = arith.constant 0 : i32
    %c0_i32_1 = arith.constant 0 : i32
    return %c0_i32, %c0_i32_0 : i32, i32
  }
  func.func @transform_1(%arg0: i32) -> (i32, i32) {
    %c0_i32 = arith.constant 0 : i32
    %c0_i32_0 = arith.constant 0 : i32
    return %c0_i32, %arg0 : i32, i32
  }
  func.func @transform_2(%arg0: i32) -> (i32, i32) {
    %c0_i32 = arith.constant 0 : i32
    %c0_i32_0 = arith.constant 0 : i32
    return %c0_i32, %arg0 : i32, i32
  }
}

</mosaic_0001>

<bundles_post_ra>
// kernel: tpu_custom_call.1
= control target key start
LH: loop header
LB: loop body
LE: loop exit
PB: predicated region body
PF: predicated region fallthrough
CT: control target
= control target key end

     0   :  { %7 = vsyncpa [#allocation3], 0  ;;  %s601_s0 = inlined_call_operand.hbm [shape: bf16[16,109], index: 0, kind: input, shape index: {}]   ;;  %s602_s1 = inlined_call_operand.hbm [shape: bf16[109,512], index: 1, kind: input, shape index: {}]   ;;  %s603_s2 = inlined_call_operand.hbm [shape: f32[8,512], index: 2, kind: output, shape index: {}]  }
   0x1   :  { %8 = vsyncpa [#allocation6], 0 }
   0x2   :  { %9 = vsyncpa [#allocation4], 0  ;;  %s541_s9 = smov [#allocation2]   ;;  %s469_s13 = scalar_lea.hbm %s601_s0, 128 }
   0x3   :  { %s15_s10 = sshll.u32 %s541_s9, 4  ;;  %p470_p0 = scmp.ne.s32.totalorder %s601_s0, %s469_s13  ;;  %s16_s10 = int_to_ptr.vmem [resolvable:$true] %s15_s10 }
   0x4   :  { %p473_p1 = scmp.lt.u32.totalorder %s469_s13, %s601_s0 }
   0x6   :  { %p475_p2 = pnand %p473_p1, %p470_p0 }
   0x8   :  { %478 = shalt.err (!%p475_p2)
}
   0x9   :  { %s479_s18 = scalar_lea.vmem %s16_s10, 128  ;;  %p484_p4 = scmp.lt.s32.totalorder %s16_s10, %s16_s10 }
   0xa   :  { %p480_p3 = scmp.ne.s32.totalorder %s16_s10, %s479_s18  ;;  %p485_p5 = scmp.lt.s32.totalorder %s479_s18, %s479_s18 }
   0xc   :  { %p486_p6 = por %p485_p5, %p484_p4 }
   0xe   :  { %p487_p7 = pnand %p486_p6, %p480_p3 }
  0x10   :  { %490 = shalt.err (!%p487_p7)
}
  0x11   :  { %s542_s19 = smov 64   ;;  %s543_s20 = smov 4  }
  0x12   :  { %21 = dma.hbm_to_vmem [thread:$0]  %s601_s0, 128, %s16_s10, [#allocation3], %s542_s19, %s542_s19, %s543_s20  }
  0x13   :  { %s544_s23 = smov [#allocation5]   ;;  %s491_s27 = scalar_lea.hbm %s602_s1, 3584 }
  0x14   :  { %s27_s24 = sshll.u32 %s544_s23, 4  ;;  %p492_p8 = scmp.ne.s32.totalorder %s602_s1, %s491_s27  ;;  %s28_s24 = int_to_ptr.vmem [resolvable:$true] %s27_s24 }
  0x15   :  { %p495_p9 = scmp.lt.u32.totalorder %s491_s27, %s602_s1 }
  0x17   :  { %p497_p10 = pnand %p495_p9, %p492_p8 }
  0x19   :  { %500 = shalt.err (!%p497_p10)
}
  0x1a   :  { %s501_s4 = scalar_lea.vmem %s28_s24, 3584  ;;  %p506_p12 = scmp.lt.s32.totalorder %s28_s24, %s28_s24 }
  0x1b   :  { %p502_p11 = scmp.ne.s32.totalorder %s28_s24, %s501_s4  ;;  %p507_p13 = scmp.lt.s32.totalorder %s501_s4, %s501_s4 }
  0x1d   :  { %p508_p0 = por %p507_p13, %p506_p12 }
  0x1f   :  { %p509_p1 = pnand %p508_p0, %p502_p11 }
  0x21   :  { %512 = shalt.err (!%p509_p1)
}
  0x22   :  { %s545_s0 = smov 256   ;;  %s546_s5 = smov 16  }
  0x23   :  { %33 = dma.hbm_to_vmem [thread:$0]  %s602_s1, 3584, %s28_s24, [#allocation6], %s545_s0, %s545_s0, %s546_s5  }
  0x24   :  { %535 = dma.done.wait [#allocation3], 128  }
  0x25   :  { %536 = vsyncadd [#allocation3], 4294967168 }
  0x26   :  { %537 = dma.done.wait [#allocation6], 3584  }
  0x27   :  { %538 = vsyncadd [#allocation6], 4294963712  ;;  %v547_v0 = vmov 0   ;;  %v410_v1 = vld [vmem:[#allocation5 + $0x4] ss:$16 sps:$4 sm:$0xff]   ;;  %vm216_vm0 = vcmask 1045504  }
  0x28   :  { %264 = vmatprep.mubr.bf16.mxu0 %v547_v0  ;;  %307 = vmatprep.mubr.bf16.mxu1 %v547_v0  ;;  %v412_v2 = vld [vmem:[#allocation5 + $0xc] ss:$16 sps:$4 sm:$0xff]   ;;  %v414_v3 = vld [vmem:[#allocation5] ss:$16 sps:$4 sm:$0xff]   ;;  %v415_v4 = vld [vmem:[#allocation5 + $0x8] ss:$16 sps:$4 sm:$0xff]  }
  0x29   :  { %232 = vmatprep.subr.bf16.mxu0 %v410_v1  ;;  %275 = vmatprep.subr.bf16.mxu1 %v412_v2  ;;  %v416_v5 = vld [vmem:[#allocation5 + $0x24] ss:$16 sps:$4 sm:$0xff]   ;;  %v418_v6 = vld [vmem:[#allocation5 + $0x2c] ss:$16 sps:$4 sm:$0xff]   ;;  %v420_v7 = vld [vmem:[#allocation5 + $0x20] ss:$16 sps:$4 sm:$0xff]  }
  0x2a   :  { %233 = vmatpush1.bf16.msra.mxu0 %v414_v3  ;;  %276 = vmatpush1.bf16.msra.mxu1 %v415_v4  ;;  %v421_v8 = vld [vmem:[#allocation5 + $0x28] ss:$16 sps:$4 sm:$0xff]   ;;  %v422_v9 = vld [vmem:[#allocation5 + $0x44] ss:$16 sps:$4 sm:$0xff]   ;;  %v424_v10 = vld [vmem:[#allocation5 + $0x4c] ss:$16 sps:$4 sm:$0xff]  }
  0x2b   :  { %234 = vmatprep.subr.bf16.mxu0 %v416_v5  ;;  %277 = vmatprep.subr.bf16.mxu1 %v418_v6  ;;  %v426_v11 = vld [vmem:[#allocation5 + $0x40] ss:$16 sps:$4 sm:$0xff]   ;;  %v427_v12 = vld [vmem:[#allocation5 + $0x48] ss:$16 sps:$4 sm:$0xff]   ;;  %v428_v13 = vld [vmem:[#allocation5 + $0x64] ss:$16 sps:$4 sm:$0xff]  }
  0x2c   :  { %v430_v14 = vld [vmem:[#allocation5 + $0x6c] ss:$16 sps:$4 sm:$0xff]   ;;  %v432_v15 = vld [vmem:[#allocation5 + $0x60] ss:$16 sps:$4 sm:$0xff]   ;;  %v433_v16 = vld [vmem:[#allocation5 + $0x68] ss:$16 sps:$4 sm:$0xff]  }
  0x2d   :  { %v434_v17 = vld [vmem:[#allocation5 + $0x84] ss:$16 sps:$4 sm:$0xff]   ;;  %v436_v18 = vld [vmem:[#allocation5 + $0x8c] ss:$16 sps:$4 sm:$0xff]   ;;  %v438_v19 = vld [vmem:[#allocation5 + $0x80] ss:$16 sps:$4 sm:$0xff]  }
  0x2e   :  { %235 = vmatpush1.bf16.msra.mxu0 %v420_v7  ;;  %278 = vmatpush1.bf16.msra.mxu1 %v421_v8  ;;  %vm217_vm1 = vcmask 1046528   ;;  %v548_v20 = vmov 65535   ;;  %v439_v22 = vld [vmem:[#allocation5 + $0x88] ss:$16 sps:$4 sm:$0xff]   ;;  %v440_v23 = vld [vmem:[#allocation5 + $0xa4] ss:$16 sps:$4 sm:$0xff]  }
  0x2f   :  { %236 = vmatprep.subr.bf16.mxu0 %v422_v9  ;;  %279 = vmatprep.subr.bf16.mxu1 %v424_v10  ;;  %v218_v21 = vsel %vm216_vm0, 4294967295, %v548_v20  ;;  %v442_v24 = vld [vmem:[#allocation5 + $0xac] ss:$16 sps:$4 sm:$0xff]   ;;  %v446_v25 = vld [vmem:[#allocation5 + $0xc4] ss:$16 sps:$4 sm:$0x7f]  }
  0x30   :  { %v448_v26 = vld [vmem:[#allocation5 + $0xcc] ss:$16 sps:$4 sm:$0x7f]   ;;  %v444_v27 = vld [vmem:[#allocation5 + $0xa0] ss:$16 sps:$4 sm:$0xff]   ;;  %v219_v28 = vsel %vm217_vm1, %v218_v21, 0 }
  0x31   :  { %v445_v29 = vld [vmem:[#allocation5 + $0xa8] ss:$16 sps:$4 sm:$0xff]   ;;  %v450_v30 = vld [vmem:[#allocation5 + $0xc0] ss:$16 sps:$4 sm:$0x7f]   ;;  %v224_v32 = vand.u32 %v446_v25, %v219_v28  ;;  %v230_v33 = vand.u32 %v448_v26, %v219_v28  ;;  %vm212_vm2 = vcmask 891904  }
  0x32   :  { %237 = vmatpush1.bf16.msra.mxu0 %v426_v11  ;;  %280 = vmatpush1.bf16.msra.mxu1 %v427_v12  ;;  %v451_v31 = vld [vmem:[#allocation5 + $0xc8] ss:$16 sps:$4 sm:$0x7f]   ;;  %v221_v34 = vand.u32 %v450_v30, %v219_v28  ;;  %s549_s1 = smov [#allocation7]  }
  0x33   :  { %238 = vmatprep.subr.bf16.mxu0 %v428_v13  ;;  %281 = vmatprep.subr.bf16.mxu1 %v430_v14  ;;  %v227_v35 = vand.u32 %v451_v31, %v219_v28  ;;  %v452_v36 = vld [vmem:[#allocation2] sm:$0xff]   ;;  %s356_s8 = sshll.u32 %s549_s1, 4  ;;  %s357_s8 = int_to_ptr.vmem [resolvable:$true] %s356_s8 }
  0x34   :  { %s513_s9 = scalar_lea.vmem %s357_s8, 512  ;;  %p518_p3 = scmp.lt.s32.totalorder %s357_s8, %s357_s8 }
  0x35   :  { %p514_p2 = scmp.ne.s32.totalorder %s357_s8, %s513_s9  ;;  %p519_p4 = scmp.lt.s32.totalorder %s513_s9, %s513_s9 }
  0x36   :  { %239 = vmatpush1.bf16.msra.mxu0 %v432_v15  ;;  %282 = vmatpush1.bf16.msra.mxu1 %v433_v16 }
  0x37   :  { %240 = vmatprep.subr.bf16.mxu0 %v434_v17  ;;  %283 = vmatprep.subr.bf16.mxu1 %v436_v18  ;;  %p520_p5 = por %p519_p4, %p518_p3 }
  0x39   :  { %p521_p6 = pnand %p520_p5, %p514_p2 }
  0x3a   :  { %241 = vmatpush1.bf16.msra.mxu0 %v438_v19  ;;  %284 = vmatpush1.bf16.msra.mxu1 %v439_v22 }
  0x3b   :  { %242 = vmatprep.subr.bf16.mxu0 %v440_v23  ;;  %285 = vmatprep.subr.bf16.mxu1 %v442_v24 }
  0x3e   :  { %243 = vmatpush1.bf16.msra.mxu0 %v444_v27  ;;  %286 = vmatpush1.bf16.msra.mxu1 %v445_v29 }
  0x3f   :  { %244 = vmatprep.subr.bf16.mxu0 %v224_v32  ;;  %287 = vmatprep.subr.bf16.mxu1 %v230_v33 }
  0x42   :  { %245 = vmatpush1.bf16.msra.mxu0 %v221_v34  ;;  %288 = vmatpush1.bf16.msra.mxu1 %v227_v35 }
  0x45   :  { %395 = vmatmul.mubr.msk.bf16.vlgmr.msra.gmra.mrb[0].mxu0 %vm212_vm2, %v452_v36  ;;  %396 = vmatmul.mubr.msk.bf16.vlgmr.msra.gmra.mrb[0].mxu1 %vm212_vm2, %v452_v36 }
 0x118   :  { %v266_v37 = vpop.f32.mrb[0].mxu0  ;;  %v309_v38 = vpop.f32.mrb[0].mxu1 }
 0x119   :  { %v268_v39 = vpop.f32.mrb[1].mxu0  ;;  %v311_v40 = vpop.f32.mrb[1].mxu1 }
 0x11a   :  { %v270_v41 = vpop.f32.mrb[2].mxu0  ;;  %v313_v42 = vpop.f32.mrb[2].mxu1 }
 0x11b   :  { %v397_v43 = vmul.f32 -1.442695, %v270_v41  ;;  %v399_v44 = vmul.f32 -1.442695, %v313_v42  ;;  %v272_v45 = vpop.f32.mrb[3].mxu0  ;;  %v315_v46 = vpop.f32.mrb[3].mxu1 }
 0x11c   :  { %v398_v47 = vmul.f32 -1.442695, %v272_v45  ;;  %v400_v48 = vmul.f32 -1.442695, %v315_v46 }
 0x11d   :  { %453 = vpow2.f32 %v397_v43 }
 0x11e   :  { %455 = vpow2.f32 %v399_v44 }
 0x11f   :  { %457 = vpow2.f32 %v398_v47 }
 0x120   :  { %459 = vpow2.f32 %v400_v48 }
 0x127   :  { %v454_v49 = vpop.eup %453 }
 0x128   :  { %v456_v50 = vpop.eup %455  ;;  %v330_v51 = vadd.f32 1.0, %v454_v49 }
 0x129   :  { %v458_v52 = vpop.eup %457  ;;  %v332_v53 = vadd.f32 1.0, %v456_v50 }
 0x12a   :  { %v460_v54 = vpop.eup %459  ;;  %461 = vrcp.f32 %v330_v51  ;;  %v331_v55 = vadd.f32 1.0, %v458_v52 }
 0x12b   :  { %463 = vrcp.f32 %v332_v53  ;;  %v333_v56 = vadd.f32 1.0, %v460_v54 }
 0x12c   :  { %465 = vrcp.f32 %v331_v55 }
 0x12d   :  { %467 = vrcp.f32 %v333_v56 }
 0x134   :  { %v462_v57 = vpop.eup %461 }
 0x135   :  { %v464_v58 = vpop.eup %463  ;;  %v342_v59 = vmul.f32 %v462_v57, %v266_v37 }
 0x136   :  { %v466_v60 = vpop.eup %465  ;;  %v344_v61 = vmul.f32 %v464_v58, %v309_v38 }
 0x137   :  { %v468_v62 = vpop.eup %467  ;;  %v343_v63 = vmul.f32 %v466_v60, %v268_v39  ;;  %346 = vst [vmem:[#allocation7] sm:$0xff] %v342_v59 }
 0x138   :  { %v345_v0 = vmul.f32 %v468_v62, %v311_v40  ;;  %348 = vst [vmem:[#allocation7 + $0x10] sm:$0xff] %v344_v61 }
 0x139   :  { %347 = vst [vmem:[#allocation7 + $0x8] sm:$0xff] %v343_v63 }
 0x13a   :  { %349 = vst [vmem:[#allocation7 + $0x18] sm:$0xff] %v345_v0 }
 0x13b   :  { %524 = shalt.err (!%p521_p6)
}
 0x13c   :  { %s525_s12 = scalar_lea.hbm %s603_s2, 512 }
 0x13d   :  { %p526_p7 = scmp.ne.s32.totalorder %s603_s2, %s525_s12  ;;  %p529_p8 = scmp.lt.u32.totalorder %s525_s12, %s603_s2 }
 0x13f   :  { %p531_p9 = pnand %p529_p8, %p526_p7 }
 0x141   :  { %534 = shalt.err (!%p531_p9)
}
 0x142   :  { %359 = dma.vmem_to_hbm [thread:$0]  %s357_s8, 512, %s603_s2, [#allocation4]  }
 0x143   :  { %539 = dma.done.wait [#allocation4], 512  }
 0x144   :  { %540 = vsyncadd [#allocation4], 4294966784 }
 0x145   :  { %363 = vsyncpa [#allocation3], 1 }
 0x146   :  { %364 = vsyncpa [#allocation6], 1 }
 0x147   :  { %365 = vsyncpa [#allocation4], 1 }

</bundles_post_ra>
